<compile_context>
chip_gen: v5e
topology: v5e:2x2
jax: 0.10.0
libtpu: 0.0.40
codegen_flags: <defaults>
</compile_context>

<pallas_src>
import jax
import jax.numpy as jnp
import numpy as np
from jax.experimental import pallas as pl
from jax.experimental.pallas import tpu as pltpu


LANE = 128
MAX_TILE_L = 8192   # ~2.25 MiB per step (x+cond+out, C=32 f32); ~4.5 MiB double-buffered


def residual_block_kernel(x_ref, cond_ref, pt_ref, gamma_ref, bias_ref, wc_ref, o_ref):
    """One (batch, L-tile) grid step, channels-first (C on sublanes, L on lanes).

    x_ref    : (1, C, TL)    input tile (f32 or bf16)
    cond_ref : (1, C2, TL)   conditioning tile (C2 = 2 * in_channels)
    pt_ref   : (B, C, 1)     whole-array resident fc_t(diffusion_step_embed), f32
    gamma_ref: (C, 1)        LayerNorm weight, f32
    bias_ref : (C, 1)        LayerNorm bias + cond_conv bias (pre-summed), f32
    wc_ref   : (C, C2)       cond_conv (kernel_size=1) weight, f32
    o_ref    : (1, C, TL)    output tile
    """
    b = pl.program_id(0)

    xf = x_ref[0].astype(jnp.float32)              # (C, TL)
    cond = cond_ref[0].astype(jnp.float32)         # (C2, TL)
    pt = pt_ref[b]                                 # (C, 1)

    z = xf + pt                                    # broadcast part_t over L (lanes)

    # LayerNorm over the channel (sublane) axis, eps=1e-5, biased variance (f32 math).
    mean = jnp.mean(z, axis=0, keepdims=True)                      # (1, TL)
    ctr = z - mean
    var = jnp.mean(ctr * ctr, axis=0, keepdims=True)               # (1, TL)
    zn = ctr * jax.lax.rsqrt(var + 1e-5) * gamma_ref[...]          # (C, TL)

    # TODO(synk): self.layer is an externally injected S4 module (not defined in
    # this file); it is treated as identity here.

    # cond_conv: Conv1d(2*Cin -> C, kernel_size=1, stride=1) == pointwise matmul.
    cond_out = jnp.dot(wc_ref[...], cond, preferred_element_type=jnp.float32)  # (C, TL)

    # (ln_beta + cond_bias) folded into bias_ref; dropout rate 0 -> identity;
    # residual add of the original input.
    o_ref[0] = (zn + cond_out + bias_ref[...] + xf).astype(o_ref.dtype)


def _round_up(n, m):
    return ((n + m - 1) // m) * m


def residual_block_forward(x_ncl, cond_ncl, diff_emb, params, *, max_tile_l=MAX_TILE_L):
    """x_ncl: (B, C, L); cond_ncl: (B, 2*Cin, L); diff_emb: (B, E) -> (B, C, L)."""
    B, C, L = x_ncl.shape
    _, C2, _ = cond_ncl.shape

    # Hoisted fc_t: tiny (B,E) @ (E,C) matmul, computed once outside the grid (f32).
    part_t = (diff_emb.astype(jnp.float32) @ params["fc_t_w"].astype(jnp.float32).T
              + params["fc_t_b"].astype(jnp.float32))              # (B, C)
    part_t = part_t[:, :, None]                                    # (B, C, 1)

    gamma = params["ln_w"].astype(jnp.float32)[:, None]            # (C, 1)
    # Fold LayerNorm beta and cond_conv bias into a single per-channel bias.
    bias = (params["ln_b"].astype(jnp.float32)
            + params["cond_b"].astype(jnp.float32))[:, None]       # (C, 1)
    wc = params["cond_w"].astype(jnp.float32)                      # (C, C2)

    # Pad L to a multiple of 128 so the output block is lane-dense (unmasked vst).
    Lp = _round_up(L, LANE)
    if Lp != L:
        pad = ((0, 0), (0, 0), (0, Lp - L))
        x_p = jnp.pad(x_ncl, pad)
        cond_p = jnp.pad(cond_ncl, pad)
    else:
        x_p, cond_p = x_ncl, cond_ncl

    tl = min(Lp, max_tile_l)
    grid = (B, pl.cdiv(Lp, tl))

    # Explicit VMEM budget (double-buffered x + out + cond, plus headroom).
    dsize = jnp.dtype(x_ncl.dtype).itemsize
    step_bytes = 2 * (2 * C * tl * dsize + C2 * tl * dsize)
    vmem_limit = int(min(48 * 1024 * 1024, max(16 * 1024 * 1024, 2 * step_bytes)))

    out = pl.pallas_call(
        residual_block_kernel,
        out_shape=jax.ShapeDtypeStruct((B, C, Lp), x_ncl.dtype),
        grid_spec=pltpu.PrefetchScalarGridSpec(
            num_scalar_prefetch=0,
            grid=grid,
            in_specs=[
                pl.BlockSpec((1, C, tl), lambda b, l: (b, 0, l)),     # x tile
                pl.BlockSpec((1, C2, tl), lambda b, l: (b, 0, l)),    # cond tile
                pl.BlockSpec((B, C, 1), lambda b, l: (0, 0, 0)),      # part_t (resident)
                pl.BlockSpec((C, 1), lambda b, l: (0, 0)),            # ln gamma
                pl.BlockSpec((C, 1), lambda b, l: (0, 0)),            # ln beta + cond bias
                pl.BlockSpec((C, C2), lambda b, l: (0, 0)),           # cond_conv weight
            ],
            out_specs=pl.BlockSpec((1, C, tl), lambda b, l: (b, 0, l)),
        ),
        compiler_params=pltpu.CompilerParams(
            dimension_semantics=("parallel", "parallel"),
            vmem_limit_bytes=vmem_limit),
    )(x_p, cond_p, part_t, gamma, bias, wc)

    if Lp != L:
        out = out[:, :, :L]
    return out


def reference_forward(x_ncl, cond_ncl, diff_emb, params):
    """Pure-JAX reference mirroring the PyTorch forward (all f32)."""
    x_ncl = x_ncl.astype(jnp.float32)
    cond_ncl = cond_ncl.astype(jnp.float32)
    diff_emb = diff_emb.astype(jnp.float32)
    part_t = diff_emb @ params["fc_t_w"].T + params["fc_t_b"]      # (B, C)
    z = x_ncl + part_t[:, :, None]                                 # (B, C, L)
    zt = jnp.transpose(z, (0, 2, 1))                               # (B, L, C)
    mean = jnp.mean(zt, axis=-1, keepdims=True)
    var = jnp.mean((zt - mean) ** 2, axis=-1, keepdims=True)
    zt = (zt - mean) / jnp.sqrt(var + 1e-5) * params["ln_w"] + params["ln_b"]
    z = jnp.transpose(zt, (0, 2, 1))                               # (B, C, L)
    # layer == identity (external S4 module)
    cond_out = jnp.einsum("oc,bcl->bol", params["cond_w"], cond_ncl) \
        + params["cond_b"][None, :, None]
    z = z + cond_out
    return z + x_ncl


if __name__ == "__main__":
    # Module hyper-parameters (small, consistent with the forward pass)
    B = 2
    d_model = 32          # C
    L = 16                # sequence length (padded to 128 inside the wrapper)
    in_channels = 4       # cond has 2*in_channels = 8 channels
    diff_emb_dim = 64     # diffusion_step_embed_dim_out
    # stride = 1 -> cond_conv kernel_size=1, stride=1, padding=0
    # dropout = 0.0 -> Identity ; label_embed_dim = None -> fc_label unused

    key = jax.random.PRNGKey(0)
    k = jax.random.split(key, 10)

    x = jax.random.normal(k[0], (B, d_model, L), jnp.float32)
    cond = jax.random.normal(k[1], (B, 2 * in_channels, L), jnp.float32)
    diff_emb = jax.random.normal(k[2], (B, diff_emb_dim), jnp.float32)

    params = {
        # fc_t: Linear(diff_emb_dim -> d_model)
        "fc_t_w": jax.random.normal(k[3], (d_model, diff_emb_dim), jnp.float32) * 0.1,
        "fc_t_b": jax.random.normal(k[4], (d_model,), jnp.float32) * 0.1,
        # LayerNorm(d_model)
        "ln_w": jnp.ones((d_model,), jnp.float32),
        "ln_b": jnp.zeros((d_model,), jnp.float32),
        # cond_conv: weight-normed Conv1d(2*in_channels -> d_model, k=1) — effective
        # weight after weight_norm(kaiming init) equals the kaiming-init weight.
        "cond_w": jax.random.normal(k[5], (d_model, 2 * in_channels), jnp.float32)
                  * np.sqrt(2.0 / (2 * in_channels)),
        "cond_b": jax.random.normal(k[6], (d_model,), jnp.float32) * 0.1,
    }

    # f32 I/O path
    out = residual_block_forward(x, cond, diff_emb, params)
    out = jax.block_until_ready(out)
    ref = reference_forward(x, cond, diff_emb, params)
    np.testing.assert_allclose(np.asarray(out), np.asarray(ref), rtol=1e-5, atol=1e-5)

    # bf16 I/O path (halves HBM bytes on this bandwidth-bound kernel); LayerNorm
    # math stays in f32 inside the kernel.
    x_bf = x.astype(jnp.bfloat16)
    cond_bf = cond.astype(jnp.bfloat16)
    out_bf = residual_block_forward(x_bf, cond_bf, diff_emb, params)
    out_bf = jax.block_until_ready(out_bf)
    ref_bf = reference_forward(x_bf, cond_bf, diff_emb, params)
    np.testing.assert_allclose(np.asarray(out_bf, dtype=np.float32),
                               np.asarray(ref_bf), rtol=5e-2, atol=5e-2)

    print("KERNEL_OK")
</pallas_src>

<mosaic_0001>
module attributes {stable_mosaic.version = 11 : i64} {
  func.func @residual_block_kernel(%arg0: i32, %arg1: i32, %arg2: memref<1x32x128xf32, #tpu.memory_space<vmem>>, %arg3: memref<1x8x128xf32, #tpu.memory_space<vmem>>, %arg4: memref<2x32x1xf32, #tpu.memory_space<vmem>>, %arg5: memref<32x1xf32, #tpu.memory_space<vmem>>, %arg6: memref<32x1xf32, #tpu.memory_space<vmem>>, %arg7: memref<32x8xf32, #tpu.memory_space<vmem>>, %arg8: memref<1x32x128xf32, #tpu.memory_space<vmem>>) attributes {dimension_semantics = [#tpu.dimension_semantics<parallel>, #tpu.dimension_semantics<parallel>], iteration_bounds = array<i64: 2, 1>, scalar_prefetch = 0 : i64, scratch_operands = 0 : i64, tpu.core_type = #tpu.core_type<tc>, window_params = [{transform_indices = @transform_0, window_bounds = array<i64: 1, 32, 128>}, {transform_indices = @transform_1, window_bounds = array<i64: 1, 8, 128>}, {pipeline_mode = #tpu.pipeline_mode<synchronous>, transform_indices = @transform_2, window_bounds = array<i64: 2, 32, 1>}, {pipeline_mode = #tpu.pipeline_mode<synchronous>, transform_indices = @transform_3, window_bounds = array<i64: 32, 1>}, {pipeline_mode = #tpu.pipeline_mode<synchronous>, transform_indices = @transform_4, window_bounds = array<i64: 32, 1>}, {pipeline_mode = #tpu.pipeline_mode<synchronous>, transform_indices = @transform_5, window_bounds = array<i64: 32, 8>}, {transform_indices = @transform_6, window_bounds = array<i64: 1, 32, 128>}]} {
    %c0 = arith.constant 0 : index
    %c0_0 = arith.constant 0 : index
    %c0_1 = arith.constant 0 : index
    %0 = vector.load %arg2[%c0, %c0_0, %c0_1] : memref<1x32x128xf32, #tpu.memory_space<vmem>>, vector<1x32x128xf32>
    %1 = vector.shape_cast %0 : vector<1x32x128xf32> to vector<32x128xf32>
    %c0_2 = arith.constant 0 : index
    %c0_3 = arith.constant 0 : index
    %c0_4 = arith.constant 0 : index
    %2 = vector.load %arg3[%c0_2, %c0_3, %c0_4] : memref<1x8x128xf32, #tpu.memory_space<vmem>>, vector<1x8x128xf32>
    %3 = vector.shape_cast %2 : vector<1x8x128xf32> to vector<8x128xf32>
    %4 = arith.index_cast %arg0 : i32 to index
    %c0_5 = arith.constant 0 : index
    %c0_6 = arith.constant 0 : index
    %5 = vector.load %arg4[%4, %c0_5, %c0_6] : memref<2x32x1xf32, #tpu.memory_space<vmem>>, vector<1x32x1xf32>
    %6 = vector.shape_cast %5 : vector<1x32x1xf32> to vector<32x1xf32>
    %7 = vector.broadcast %6 : vector<32x1xf32> to vector<32x128xf32>
    %8 = arith.addf %1, %7 : vector<32x128xf32>
    %cst = arith.constant dense<0.000000e+00> : vector<128xf32>
    %9 = vector.multi_reduction <add>, %8, %cst [0] : vector<32x128xf32> to vector<128xf32>
    %10 = vector.shape_cast %9 : vector<128xf32> to vector<1x128xf32>
    %cst_7 = arith.constant 3.200000e+01 : f32
    %11 = vector.broadcast %cst_7 : f32 to vector<1x128xf32>
    %12 = arith.divf %10, %11 : vector<1x128xf32>
    %13 = vector.broadcast %12 : vector<1x128xf32> to vector<32x128xf32>
    %14 = arith.subf %8, %13 : vector<32x128xf32>
    %15 = arith.mulf %14, %14 : vector<32x128xf32>
    %cst_8 = arith.constant dense<0.000000e+00> : vector<128xf32>
    %16 = vector.multi_reduction <add>, %15, %cst_8 [0] : vector<32x128xf32> to vector<128xf32>
    %17 = vector.shape_cast %16 : vector<128xf32> to vector<1x128xf32>
    %cst_9 = arith.constant 3.200000e+01 : f32
    %18 = vector.broadcast %cst_9 : f32 to vector<1x128xf32>
    %19 = arith.divf %17, %18 : vector<1x128xf32>
    %cst_10 = arith.constant 9.99999974E-6 : f32
    %20 = vector.broadcast %cst_10 : f32 to vector<1x128xf32>
    %21 = arith.addf %19, %20 : vector<1x128xf32>
    %22 = math.rsqrt %21 : vector<1x128xf32>
    %23 = vector.broadcast %22 : vector<1x128xf32> to vector<32x128xf32>
    %24 = arith.mulf %14, %23 : vector<32x128xf32>
    %c0_11 = arith.constant 0 : index
    %c0_12 = arith.constant 0 : index
    %25 = vector.load %arg5[%c0_11, %c0_12] : memref<32x1xf32, #tpu.memory_space<vmem>>, vector<32x1xf32>
    %26 = vector.broadcast %25 : vector<32x1xf32> to vector<32x128xf32>
    %27 = arith.mulf %24, %26 : vector<32x128xf32>
    %c0_13 = arith.constant 0 : index
    %c0_14 = arith.constant 0 : index
    %28 = vector.load %arg7[%c0_13, %c0_14] : memref<32x8xf32, #tpu.memory_space<vmem>>, vector<32x8xf32>
    %cst_15 = arith.constant dense<0.000000e+00> : vector<32x128xf32>
    %29 = tpu.matmul %28, %3, %cst_15 {dimension_numbers = #tpu.dot_dimension_numbers<[1], [0], [0], [1], [0, 0, 1, 1], [], []>} : vector<32x8xf32>, vector<8x128xf32>, vector<32x128xf32> -> vector<32x128xf32>
    %30 = arith.addf %27, %29 : vector<32x128xf32>
    %c0_16 = arith.constant 0 : index
    %c0_17 = arith.constant 0 : index
    %31 = vector.load %arg6[%c0_16, %c0_17] : memref<32x1xf32, #tpu.memory_space<vmem>>, vector<32x1xf32>
    %32 = vector.broadcast %31 : vector<32x1xf32> to vector<32x128xf32>
    %33 = arith.addf %30, %32 : vector<32x128xf32>
    %34 = arith.addf %33, %1 : vector<32x128xf32>
    %c0_18 = arith.constant 0 : index
    %c0_19 = arith.constant 0 : index
    %c0_20 = arith.constant 0 : index
    %35 = vector.load %arg8[%c0_18, %c0_19, %c0_20] : memref<1x32x128xf32, #tpu.memory_space<vmem>>, vector<1x32x128xf32>
    %36 = vector.shape_cast %35 : vector<1x32x128xf32> to vector<32x128xf32>
    %37 = vector.shape_cast %34 : vector<32x128xf32> to vector<1x32x128xf32>
    tpu.vector_store %arg8[%c0_18, %c0_19, %c0_20], %37 {strides = array<i32>} : memref<1x32x128xf32, #tpu.memory_space<vmem>>, vector<1x32x128xf32>,
    return
  }
  func.func @transform_0(%arg0: i32, %arg1: i32) -> (i32, i32, i32) {
    %c0_i32 = arith.constant 0 : i32
    %c0_i32_0 = arith.constant 0 : i32
    return %arg0, %c0_i32, %arg1 : i32, i32, i32
  }
  func.func @transform_1(%arg0: i32, %arg1: i32) -> (i32, i32, i32) {
    %c0_i32 = arith.constant 0 : i32
    %c0_i32_0 = arith.constant 0 : i32
    return %arg0, %c0_i32, %arg1 : i32, i32, i32
  }
  func.func @transform_2(%arg0: i32, %arg1: i32) -> (i32, i32, i32) {
    %c0_i32 = arith.constant 0 : i32
    %c0_i32_0 = arith.constant 0 : i32
    %c0_i32_1 = arith.constant 0 : i32
    %c0_i32_2 = arith.constant 0 : i32
    return %c0_i32, %c0_i32_0, %c0_i32_1 : i32, i32, i32
  }
  func.func @transform_3(%arg0: i32, %arg1: i32) -> (i32, i32) {
    %c0_i32 = arith.constant 0 : i32
    %c0_i32_0 = arith.constant 0 : i32
    %c0_i32_1 = arith.constant 0 : i32
    return %c0_i32, %c0_i32_0 : i32, i32
  }
  func.func @transform_4(%arg0: i32, %arg1: i32) -> (i32, i32) {
    %c0_i32 = arith.constant 0 : i32
    %c0_i32_0 = arith.constant 0 : i32
    %c0_i32_1 = arith.constant 0 : i32
    return %c0_i32, %c0_i32_0 : i32, i32
  }
  func.func @transform_5(%arg0: i32, %arg1: i32) -> (i32, i32) {
    %c0_i32 = arith.constant 0 : i32
    %c0_i32_0 = arith.constant 0 : i32
    %c0_i32_1 = arith.constant 0 : i32
    return %c0_i32, %c0_i32_0 : i32, i32
  }
  func.func @transform_6(%arg0: i32, %arg1: i32) -> (i32, i32, i32) {
    %c0_i32 = arith.constant 0 : i32
    %c0_i32_0 = arith.constant 0 : i32
    return %arg0, %c0_i32, %arg1 : i32, i32, i32
  }
}

</mosaic_0001>

<bundles_post_ra>
// kernel: tpu_custom_call.1
= control target key start
LH: loop header
LB: loop body
LE: loop exit
PB: predicated region body
PF: predicated region fallthrough
CT: control target
= control target key end

     0   :  { %11 = vsyncpa [#allocation3], 0  ;;  %s994_s0 = inlined_call_operand.vmem [shape: f32[2,32,128], index: 0, kind: input, shape index: {}]   ;;  %s995_s1 = inlined_call_operand.vmem [shape: f32[2,8,128], index: 1, kind: input, shape index: {}]   ;;  %s996_s2 = inlined_call_operand.vmem [shape: f32[2,32,1], index: 2, kind: input, shape index: {}]   ;;  %s997_s3 = inlined_call_operand.vmem [shape: f32[32,1], index: 3, kind: input, shape index: {}]   ;;  %s998_s4 = inlined_call_operand.vmem [shape: f32[32,1], index: 4, kind: input, shape index: {}]   ;;  %s999_s5 = inlined_call_operand.vmem [shape: f32[32,8], index: 5, kind: input, shape index: {}]   ;;  %s1000_s6 = inlined_call_operand.hbm [shape: f32[2,32,128], index: 6, kind: output, shape index: {}]  }
   0x1   :  { %13 = vsyncpa [#allocation3 + $0x1], 0  ;;  %s823_s21 = smov 0   ;;  %s825_s22 = smov 0  }
   0x2   :  { %s827_s23 = smov 0   ;;  %s829_s24 = smov 0  }
   0x3   :  { %s831_s25 = smov 0   ;;  %s833_s26 = smov 0  }
   0x4 LB: > { %s614_s27 = sadd.s32 4294967295, %s782_s26   ;;  %s615_s28 = sadd.s32 4294967294, %s782_s26   ;;  %s782_s26 = sphi %s833_s26, %s19_s26   ;;  %s778_s25 = sphi %s831_s25, %s1007_s25   ;;  %s774_s24 = sphi %s829_s24, %s1006_s24   ;;  %s770_s23 = sphi %s827_s23, %s1005_s23   ;;  %s766_s22 = sphi %s825_s22, %s1004_s22   ;;  %s762_s21 = sphi %s823_s21, %s1003_s21  }
   0x5   : > { %s31_s29 = sadd.s32 1, %s778_s25  ;;  %s180_s30 = sadd.s32 1, %s770_s23 }
   0x6   : > { %p33_p0 = scmp.ge.s32.totalorder %s31_s29, 2  ;;  %p190_p1 = scmp.ne.s32.totalorder %s770_s23, %s766_s22 }
   0x7   : > { %p191_p2 = scmp.eq.s32.totalorder %s614_s27, 1  ;;  %p196_p3 = scmp.ne.s32.totalorder %s766_s22, %s762_s21 }
   0x8   : > { %s1009_s29 = smov (%p33_p0, %s31_s29), 0  ;;  %p197_p5 = scmp.eq.s32.totalorder %s615_s28, 1 }
   0x9   : > { %p863_p4 = por %p191_p2, %p190_p1  ;;  %s175_s8 = ssub.s32 %s778_s25, %s1009_s29 }
   0xa   : > { %p618_p6 = scmp.ge.s32.totalorder %s782_s26, 1  ;;  %p178_p7 = scmp.eq.s32.totalorder %s175_s8, 0 }
   0xb   : > { %p870_p8 = por %p197_p5, %p196_p3  ;;  %p248_p9 = scmp.lt.s32.totalorder %s782_s26, 3 }
   0xc   : > { %s876_s10 = scalar_select %p178_p7, %s770_s23, %s180_s30  }
   0xd   : > { %p249_p10 = pnand %p618_p6, %p248_p9 }
   0xe   : > { %s623_s11 = sshll.u32 (!%p249_p10), %s774_s24, 5  ;;  %p288_p11 = scmp.lt.s32.totalorder (!%p249_p10), %s774_s24, 1 }
   0xf   : > { %252 = sbr.rel (%p249_p10) target bundleno = 229 (0xe5), region = 44  ;;  %s309_s14 = scalar_lea.vmem (!%p249_p10), %s996_s2, %s623_s11 }
  0x10   : > { %s515_s15 = scalar_lea.hbm (!%p249_p10), %s1000_s6, %s623_s11  ;;  %s724_s28 = scalar_lea.hbm (!%p249_p10), %s1000_s6, 64 }
  0x11   : > { %s518_s16 = sshll.u32 (!%p249_p10), %s515_s15, 4  ;;  %s519_s16 = int_to_ptr.hbm [resolvable:$true] %s518_s16 }
  0x12   : > { %s718_s11 = sshra.s32 (!%p249_p10), %s519_s16, 4  ;;  %s719_s11 = int_to_ptr.hbm [resolvable:$true] %s718_s11 }
  0x13   : > { %s720_s20 = scalar_lea.hbm (!%p249_p10), %s719_s11, 32  ;;  %p725_p1 = scmp.lt.s32.totalorder (!%p249_p10), %s719_s11, %s1000_s6 }
  0x14   : > { %v784_v0 = vmov 0   ;;  %v388_v1 = vld [vmem:[%s997_s3] sm:$0xff]  ;;  %v312_v2 = vld [vmem:[%s309_s14 + $0x10] sm:$0xff]  ;;  %s889_s17 = scalar_select %p288_p11, %s774_s24, 1  ;;  %vm420_vm0 = vcmask 64512   ;;  %v419_v5 = vld [vmem:[%s999_s5 + $0x18] sm:$0xff] }
  0x15   : > { %698 = vset.pattern.permute.xlu1 %v784_v0  ;;  %697 = vset.pattern.permute.xlu0 %v784_v0  ;;  %v310_v3 = vld [vmem:[%s309_s14] sm:$0xff]  ;;  %v418_v4 = vld [vmem:[%s999_s5 + $0x10] sm:$0xff]  ;;  %v313_v6 = vld [vmem:[%s309_s14 + $0x18] sm:$0xff]  ;;  %v785_v20 = vmov 32.0   ;;  %p721_p12 = scmp.ne.s32.totalorder %s719_s11, %s720_s20  ;;  %p726_p2 = scmp.lt.s32.totalorder %s724_s28, %s720_s20 }
  0x16   : > { %699 = vset.pattern.permute.xlu2 %v784_v0  ;;  %326 = vperm.xlu1 %698, %v312_v2   ;;  %s622_s18 = sshll.u32 %s889_s17, 3  ;;  %v311_v7 = vld [vmem:[%s309_s14 + $0x8] sm:$0xff]  ;;  %v416_v10 = vld [vmem:[%s999_s5] sm:$0xff]  ;;  %v391_v12 = vld [vmem:[%s997_s3 + $0x18] sm:$0xff]  ;;  %s633_s14 = sshll.u32 %s889_s17, 5  ;;  %700 = vrcp.f32 %v785_v20 }
  0x17   : > { %316 = vperm.xlu0 %697, %v310_v3   ;;  %394 = vperm.xlu2 %699, %v388_v1   ;;  %s302_s27 = scalar_lea.vmem %s995_s1, %s622_s18  ;;  %v389_v9 = vld [vmem:[%s997_s3 + $0x8] sm:$0xff]  ;;  %v390_v13 = vld [vmem:[%s997_s3 + $0x10] sm:$0xff]  ;;  %v466_v14 = vld [vmem:[%s998_s4] sm:$0xff]  ;;  %s295_s30 = scalar_lea.vmem %s994_s0, %s633_s14 }
  0x18   : > { %v307_v8 = vld [vmem:[%s302_s27] sm:$0xff]  ;;  %v417_v11 = vld [vmem:[%s999_s5 + $0x8] sm:$0xff]  ;;  %v468_v15 = vld [vmem:[%s998_s4 + $0x10] sm:$0xff]  ;;  %s285_s17 = sand.u32 1, %s766_s22   ;;  %p722_p13 = pnand %p721_p12, %p863_p4 }
  0x19   : > { %636 = vmatpush.msra.mxu2 %v307_v8  ;;  %637 = vmatpush.msra.mxu3 %v307_v8  ;;  %v467_v16 = vld [vmem:[%s998_s4 + $0x8] sm:$0xff]  ;;  %v469_v17 = vld [vmem:[%s998_s4 + $0x18] sm:$0xff]  ;;  %v936_v21 = vld [vmem:[%s295_s30] sm:$0xff]  ;;  %s619_s8 = sshll.u32 %s285_s17, 5  ;;  %s503_s24 = scalar_lea.sflag [#allocation3], %s285_s17 }
  0x1a   : > { %626 = vmatmul.msk.f32.vlgmr.msra.gmra.mxu2 %vm420_vm0, %v418_v4  ;;  %627 = vmatmul.msk.f32.vlgmr.msra.gmra.mxu3 %vm420_vm0, %v419_v5  ;;  %v938_v22 = vld [vmem:[%s295_s30 + $0x8] sm:$0xff]  ;;  %v940_v24 = vld [vmem:[%s295_s30 + $0x10] sm:$0xff]  ;;  %v944_v29 = vld [vmem:[%s295_s30 + $0x18] sm:$0xff]  ;;  %s287_s18 = scalar_lea.vmem [#allocation2], %s619_s8  ;;  %p723_p0 = pneg %p722_p13 }
  0x1b   : > { %448 = vmatpush.msra.mxu0 %v307_v8  ;;  %635 = vmatpush.msra.mxu1 %v307_v8  ;;  %s516_s19 = sshll.u32 %s287_s18, 4  ;;  %p727_p3 = por %p726_p2, %p725_p1  ;;  %s517_s19 = int_to_ptr.vmem [resolvable:$true] %s516_s19 }
  0x1c   : > { %624 = vmatmul.msk.f32.vlgmr.msra.gmra.mxu0 %vm420_vm0, %v416_v10  ;;  %625 = vmatmul.msk.f32.vlgmr.msra.gmra.mxu1 %vm420_vm0, %v417_v11  ;;  %v701_v23 = vpop.eup %700 }
  0x1d   : > { %v348_v30 = vmul.f32 32.0, %v701_v23  ;;  %vm352_vm1 = vweird.f32 %v701_v23  ;;  %p728_p5 = pnand %p727_p3, %p723_p0 }
  0x1e   : > { %331 = vperm.xlu1 %698, %v313_v6  }
  0x1f   : > { %321 = vperm.xlu0 %697, %v311_v7   ;;  %399 = vperm.xlu2 %699, %v389_v9   ;;  %v349_v35 = vsub.f32 1.0, %v348_v30 }
  0x21   : > { %v350_v38 = vmul.f32 %v701_v23, %v349_v35 }
  0x23   : > { %v351_v41 = vadd.f32 %v701_v23, %v350_v38 }
  0x25   : > { %v353_v44 = vsel %vm352_vm1, %v701_v23, %v351_v41 }
  0x26   : > { %409 = vperm.xlu1 %698, %v391_v12  }
  0x27   : > { %404 = vperm.xlu0 %697, %v390_v13   ;;  %472 = vperm.xlu2 %699, %v466_v14  }
  0x2e   : > { %482 = vperm.xlu1 %698, %v468_v15  }
  0x2f   : > { %477 = vperm.xlu0 %697, %v467_v16   ;;  %487 = vperm.xlu2 %699, %v469_v17  }
  0x71   : > { %v395_v63 = vpop.permute.xlu2 %394 }
  0x79   : > { %v400_v3 = vpop.permute.xlu2 %399 }
  0x81   : > { %v473_v11 = vpop.permute.xlu2 %472 }
  0x88   : > { %v327_v18 = vpop.permute.xlu1 %326 }
  0x89   : > { %v317_v19 = vpop.permute.xlu0 %316  ;;  %v336_v31 = vadd.f32 %v327_v18, %v940_v24 }
  0x8a   : > { %v334_v26 = vadd.f32 %v317_v19, %v936_v21 }
  0x90   : > { %v332_v28 = vpop.permute.xlu1 %331 }
  0x91   : > { %v322_v25 = vpop.permute.xlu0 %321  ;;  %v337_v33 = vadd.f32 %v332_v28, %v944_v29 }
  0x92   : > { %v335_v27 = vadd.f32 %v322_v25, %v938_v22 }
  0x94   : > { %v338_v32 = vadd.f32 %v335_v27, %v334_v26 }
  0x96   : > { %v339_v34 = vadd.f32 %v338_v32, %v336_v31 }
  0x98   : > { %v340_v36 = vadd.f32 %v339_v34, %v337_v33  ;;  %v410_v8 = vpop.permute.xlu1 %409 }
  0x99   : > { %v405_v10 = vpop.permute.xlu0 %404  ;;  %v450_v18 = vpop.f32.mrf.mxu0 }
  0x9a   : > { %v341_v37 = vrot.slane %v340_v36, 4  ;;  %v453_v19 = vpop.f32.mrf.mxu1 }
  0x9c   : > { %v342_v39 = vadd.f32 %v341_v37, %v340_v36  ;;  %v488_v36 = vpop.permute.xlu2 %487 }
  0x9d   : > { %v456_v20 = vpop.f32.mrf.mxu2  ;;  %v459_v23 = vpop.f32.mrf.mxu3 }
  0x9e   : > { %v343_v40 = vrot.slane %v342_v39, 2 }
  0xa0   : > { %v344_v42 = vadd.f32 %v343_v40, %v342_v39  ;;  %v483_v30 = vpop.permute.xlu1 %482 }
  0xa1   : > { %v478_v35 = vpop.permute.xlu0 %477 }
  0xa2   : > { %v345_v43 = vrot.slane %v344_v42, 1 }
  0xa4   : > { %v346_v45 = vadd.f32 %v345_v43, %v344_v42 }
  0xa6   : > { %v354_v46 = vmul.f32 %v353_v44, %v346_v45 }
  0xa8   : > { %v355_v47 = vsub.f32 %v334_v26, %v354_v46  ;;  %v356_v48 = vsub.f32 %v335_v27, %v354_v46  ;;  %v357_v49 = vsub.f32 %v336_v31, %v354_v46  ;;  %v358_v52 = vsub.f32 %v337_v33, %v354_v46 }
  0xaa   : > { %v359_v50 = vmul.f32 %v355_v47, %v355_v47  ;;  %v360_v51 = vmul.f32 %v356_v48, %v356_v48  ;;  %v361_v53 = vmul.f32 %v357_v49, %v357_v49  ;;  %v362_v56 = vmul.f32 %v358_v52, %v358_v52 }
  0xac   : > { %v363_v54 = vadd.f32 %v360_v51, %v359_v50 }
  0xae   : > { %v364_v55 = vadd.f32 %v363_v54, %v361_v53 }
  0xb0   : > { %v365_v57 = vadd.f32 %v364_v55, %v362_v56 }
  0xb2   : > { %v366_v58 = vrot.slane %v365_v57, 4 }
  0xb4   : > { %v367_v59 = vadd.f32 %v366_v58, %v365_v57 }
  0xb6   : > { %v368_v60 = vrot.slane %v367_v59, 2 }
  0xb8   : > { %v369_v61 = vadd.f32 %v368_v60, %v367_v59 }
  0xba   : > { %v370_v62 = vrot.slane %v369_v61, 1 }
  0xbc   : > { %v371_v0 = vadd.f32 %v370_v62, %v369_v61 }
  0xbe   : > { %v372_v1 = vmul.f32 %v371_v0, %v353_v44 }
  0xc0   : > { %v373_v2 = vadd.f32 1e-05, %v372_v1 }
  0xc2   : > { %702 = vrsqrt.f32 %v373_v2  ;;  %vm380_vm3 = vweird.f32 %v373_v2 }
  0xc8   : > { %v703_v4 = vpop.eup %702 }
  0xc9   : > { %v375_v5 = vmul.f32 %v703_v4, %v373_v2  ;;  %vm381_vm2 = vweird.f32 %v703_v4 }
  0xca   : > { %vm382_vm4 = vmor %vm380_vm3, %vm381_vm2 }
  0xcb   : > { %v376_v6 = vmul.f32 %v703_v4, %v375_v5 }
  0xcd   : > { %v377_v7 = vmul.f32 0.5, %v376_v6 }
  0xcf   : > { %v378_v9 = vsub.f32 1.5, %v377_v7 }
  0xd1   : > { %v379_v12 = vmul.f32 %v703_v4, %v378_v9 }
  0xd3   : > { %v383_v13 = vsel %vm382_vm4, %v703_v4, %v379_v12 }
  0xd4   : > { %v387_v14 = vmul.f32 %v383_v13, %v358_v52  ;;  %v386_v15 = vmul.f32 %v383_v13, %v357_v49  ;;  %v384_v16 = vmul.f32 %v383_v13, %v355_v47  ;;  %v385_v17 = vmul.f32 %v383_v13, %v356_v48 }
  0xd6   : > { %v415_v25 = vmul.f32 %v410_v8, %v387_v14  ;;  %v414_v26 = vmul.f32 %v405_v10, %v386_v15  ;;  %v412_v27 = vmul.f32 %v395_v63, %v384_v16  ;;  %v413_v28 = vmul.f32 %v400_v3, %v385_v17 }
  0xd8   : > { %v462_v31 = vadd.f32 %v450_v18, %v412_v27  ;;  %v463_v32 = vadd.f32 %v453_v19, %v413_v28  ;;  %v464_v33 = vadd.f32 %v456_v20, %v414_v26  ;;  %v465_v34 = vadd.f32 %v459_v23, %v415_v25 }
  0xda   : > { %v490_v37 = vadd.f32 %v473_v11, %v462_v31  ;;  %v491_v38 = vadd.f32 %v478_v35, %v463_v32  ;;  %v492_v39 = vadd.f32 %v483_v30, %v464_v33  ;;  %v493_v40 = vadd.f32 %v488_v36, %v465_v34 }
  0xdc   : > { %v494_v41 = vadd.f32 %v490_v37, %v936_v21  ;;  %v495_v42 = vadd.f32 %v491_v38, %v938_v22  ;;  %v496_v43 = vadd.f32 %v492_v39, %v940_v24  ;;  %v497_v44 = vadd.f32 %v493_v40, %v944_v29 }
  0xde   : > { %498 = vst [vmem:[%s287_s18] sm:$0xff] %v494_v41 }
  0xdf   : > { %499 = vst [vmem:[%s287_s18 + $0x8] sm:$0xff] %v495_v42 }
  0xe0   : > { %500 = vst [vmem:[%s287_s18 + $0x10] sm:$0xff] %v496_v43 }
  0xe1   : > { %501 = vst [vmem:[%s287_s18 + $0x18] sm:$0xff] %v497_v44 }
  0xe2   : > { %731 = shalt.err (!%p728_p5)
}
  0xe3   : > { %s786_s17 = smov 128   ;;  %s787_s12 = smov 8  }
  0xe4   : > { %638 = dma.vmem_to_hbm [thread:$0]  (%p863_p4), %s517_s19, 512, %s519_s16, %s503_s24, %s786_s17, %s786_s17, %s787_s12  }
  0xe5 PF: > { %p644_p6 = scmp.ge.s32.totalorder %s782_s26, 2  ;;  %s533_s13 = sand.u32 1, %s762_s21  }
  0xe6   : > { %s534_s15 = scalar_lea.sflag [#allocation3], %s533_s13 }
  0xe7   : > { %p641_p7 = pnand %p644_p6, %p870_p8 }
  0xe9   : > { %p642_p9 = pneg %p641_p7 }
  0xeb   : > { %757 = dma.done.wait (%p642_p9), %s534_s15, 512  }
  0xec   : > { %759 = vsyncadd (%p642_p9), %s534_s15, 4294966784  ;;  %s19_s26 = sadd.s32 1, %s782_s26   ;;  %s1003_s21 = smov %s766_s22 }
  0xed   : > { %p16_p10 = scmp.ge.s32.totalorder %s19_s26, 4   ;;  %s1004_s22 = smov %s770_s23 }
  0xee   : > { %s1005_s23 = smov %s876_s10  ;;  %s1006_s24 = smov %s778_s25 }
  0xef   : > { %s1007_s25 = smov %s1009_s29  ;;  %18 = sbr.rel (!%p16_p10) target bundleno = 4 (0x4), region = 83 }
  0xf4   :  { %540 = vsyncpa [#allocation3], 1 }
  0xf5   :  { %542 = vsyncpa [#allocation3 + $0x1], 1 }

</bundles_post_ra>
